<compile_context>
chip_gen: v6e
topology: v6e:2x2x1
jax: 0.10.0
libtpu: 0.0.40
codegen_flags: <defaults>
</compile_context>

<pallas_src>
import math

import numpy as np
import jax
import jax.numpy as jnp
from jax import lax
from jax.experimental import pallas as pl
from jax.experimental.pallas import tpu as pltpu

EPS = 1e-5  # nn.InstanceNorm2d default


def _encoder_transition_kernel(x_ref, w_ref, p_ref, o_ref):
    # x_ref block: (1, B*Cin, H*W) ; w_ref: (B*Cout, B*Cin) block-diag weight
    # p_ref: (H*W, Ho*Wo) bf16 avg-pool matrix ; o_ref block: (1, B*Cout, Ho*Wo)
    x = x_ref[0].astype(jnp.float32)                         # (B*Cin, HW)

    # InstanceNorm2d (no affine, biased variance, eps=1e-5): each row is one
    # (batch, channel) instance, stats reduce over the lane (spatial) axis.
    # Two-pass variance for numerical robustness (review concern).
    mean = jnp.mean(x, axis=-1, keepdims=True)               # (B*Cin, 1)
    xc = x - mean
    var = jnp.mean(xc * xc, axis=-1, keepdims=True)          # (B*Cin, 1)
    act = jnp.maximum(xc * lax.rsqrt(var + EPS), 0.0)        # norm + ReLU

    # 2x2 average pool FIRST (smaller LHS: B*Cin rows instead of B*Cout):
    # pooled[r, p] = sum_s act[r, s] * P[s, p]; P has four 0.25 entries/col.
    p = p_ref[...].astype(jnp.float32)                       # (HW, HoWo)
    pooled = jnp.dot(act, p, preferred_element_type=jnp.float32)  # (B*Cin, HoWo)

    # 1x1 conv (no bias) on the pooled maps via block-diagonal weight:
    # out[(b,co), p] = sum_c W[co, c] * pooled[(b,c), p].
    # (Default dot precision; set precision=lax.Precision.HIGHEST for bit
    # parity with an f32 GEMM if ever needed.)
    w = w_ref[...].astype(jnp.float32)                       # (B*Cout, B*Cin)
    out = jnp.dot(w, pooled, preferred_element_type=jnp.float32)  # (B*Cout, HoWo)

    o_ref[0] = out.astype(o_ref.dtype)


def _pool_matrix_np(H: int, W: int) -> np.ndarray:
    """Fused 2x2 average-pool matrix, shape (H*W, (H//2)*(W//2)).
    Built with NumPy so it is a trace-time constant (no on-device kron)."""
    def half(size):
        h = size // 2
        src = np.arange(size) // 2
        return (src[:, None] == np.arange(h)[None, :]).astype(np.float32) * 0.5
    return np.kron(half(H), half(W))  # entries are 0 or 0.25 (exact in bf16)


def _pick_batch_block(N: int, Cin: int) -> int:
    """Largest B dividing N with B*Cin filling the 8 f32 sublanes, while
    keeping >= 2 grid steps when N allows (v7x has 2 TensorCores sharded over
    'parallel' grid axes; v5e/v6e have 1 TC and prefer fewer, bigger steps)."""
    if N <= 1:
        return 1
    want = max(1, -(-8 // Cin))        # smallest B with B*Cin >= 8
    cap = max(1, N // 2)               # keep >= 2 grid steps
    best = 1
    for b in range(1, min(want, cap) + 1):
        if N % b == 0:
            best = b
    return best


def encoder_transition(x, conv_w, *, batch_block=None):
    """x: (N, Cin, H, W) float32 ; conv_w: (Cout, Cin, 1, 1) float32
    (1x1 conv weight, bias=False). Returns (N, Cout, H//2, W//2) float32.

    Assumes H, W even (F.avg_pool2d(_, 2) with even spatial dims)."""
    N, Cin, H, W = x.shape
    Cout = conv_w.shape[0]
    Ho, Wo = H // 2, W // 2
    HW, HoWo = H * W, Ho * Wo

    B = _pick_batch_block(N, Cin) if batch_block is None else batch_block
    assert N % B == 0, "batch_block must divide N"
    G = N // B

    # Lane-dense views (wrapper-side reshapes are free layout plumbing):
    # B batch elements stacked on the sublane (row) axis, spatial on lanes.
    x3 = x.reshape(G, B * Cin, HW)
    w2 = conv_w.reshape(Cout, Cin)
    w_blk = w2 if B == 1 else jnp.kron(jnp.eye(B, dtype=w2.dtype), w2)

    # Trace-time constant pool matrix; bf16 is exact for {0, 0.25}.
    pool = jnp.asarray(_pool_matrix_np(H, W), dtype=jnp.bfloat16)

    grid_spec = pltpu.PrefetchScalarGridSpec(
        num_scalar_prefetch=0,
        grid=(G,),
        in_specs=[
            pl.BlockSpec((1, B * Cin, HW), lambda g: (g, 0, 0)),
            pl.BlockSpec((B * Cout, B * Cin), lambda g: (0, 0)),
            pl.BlockSpec((HW, HoWo), lambda g: (0, 0)),
        ],
        out_specs=pl.BlockSpec((1, B * Cout, HoWo), lambda g: (g, 0, 0)),
    )

    out = pl.pallas_call(
        _encoder_transition_kernel,
        out_shape=jax.ShapeDtypeStruct((G, B * Cout, HoWo), jnp.float32),
        grid_spec=grid_spec,
        compiler_params=pltpu.CompilerParams(
            dimension_semantics=("parallel",),
            vmem_limit_bytes=32 * 1024 * 1024),
    )(x3, w_blk, pool)

    # Rows are (b, cout)-major within each grid block, blocks are batch-major,
    # so this reshape is a pure view back to (N, Cout, Ho, Wo).
    return out.reshape(N, Cout, Ho, Wo)


def _reference(x, conv_w):
    """Pure-JAX reference matching the PyTorch module."""
    mean = jnp.mean(x, axis=(2, 3), keepdims=True)
    var = jnp.mean((x - mean) ** 2, axis=(2, 3), keepdims=True)
    act = jnp.maximum((x - mean) / jnp.sqrt(var + EPS), 0.0)
    w = conv_w.reshape(conv_w.shape[0], conv_w.shape[1])
    z = jnp.einsum("oc,nchw->nohw", w, act)
    N, Co, H, W = z.shape
    return z.reshape(N, Co, H // 2, 2, W // 2, 2).mean(axis=(3, 5))


if __name__ == "__main__":
    key = jax.random.PRNGKey(0)
    kx, kw = jax.random.split(key)

    N, Cin, H, W = 2, 4, 16, 16
    Cout = 8

    x = jax.random.normal(kx, (N, Cin, H, W), dtype=jnp.float32)
    # Conv2d(Cin, Cout, kernel_size=1, bias=False) weight: (Cout, Cin, 1, 1)
    bound = 1.0 / math.sqrt(Cin)  # fan_in = Cin * 1 * 1
    conv_w = jax.random.uniform(kw, (Cout, Cin, 1, 1), jnp.float32, -bound, bound)

    out = encoder_transition(x, conv_w)
    jax.block_until_ready(out)

    assert out.shape == (N, Cout, H // 2, W // 2)
    ref = _reference(x, conv_w)
    assert jnp.allclose(out, ref, atol=1e-4, rtol=1e-4), float(
        jnp.max(jnp.abs(out - ref)))
    print("KERNEL_OK")
</pallas_src>

<mosaic_0001>
module attributes {stable_mosaic.version = 11 : i64} {
  func.func @_encoder_transition_kernel(%arg0: i32, %arg1: memref<1x4x256xf32, #tpu.memory_space<vmem>>, %arg2: memref<8x4xf32, #tpu.memory_space<vmem>>, %arg3: memref<256x64xbf16, #tpu.memory_space<vmem>>, %arg4: memref<1x8x64xf32, #tpu.memory_space<vmem>>) attributes {dimension_semantics = [#tpu.dimension_semantics<parallel>], iteration_bounds = array<i64: 2>, scalar_prefetch = 0 : i64, scratch_operands = 0 : i64, tpu.core_type = #tpu.core_type<tc>, window_params = [{transform_indices = @transform_0, window_bounds = array<i64: 1, 4, 256>}, {pipeline_mode = #tpu.pipeline_mode<synchronous>, transform_indices = @transform_1, window_bounds = array<i64: 8, 4>}, {pipeline_mode = #tpu.pipeline_mode<synchronous>, transform_indices = @transform_2, window_bounds = array<i64: 256, 64>}, {transform_indices = @transform_3, window_bounds = array<i64: 1, 8, 64>}]} {
    %c0 = arith.constant 0 : index
    %c0_0 = arith.constant 0 : index
    %c0_1 = arith.constant 0 : index
    %0 = vector.load %arg1[%c0, %c0_0, %c0_1] : memref<1x4x256xf32, #tpu.memory_space<vmem>>, vector<1x4x256xf32>
    %1 = vector.shape_cast %0 : vector<1x4x256xf32> to vector<4x256xf32>
    %cst = arith.constant dense<0.000000e+00> : vector<4xf32>
    %2 = vector.multi_reduction <add>, %1, %cst [1] : vector<4x256xf32> to vector<4xf32>
    %3 = vector.shape_cast %2 : vector<4xf32> to vector<4x1xf32>
    %cst_2 = arith.constant 2.560000e+02 : f32
    %4 = vector.broadcast %cst_2 : f32 to vector<4x1xf32>
    %5 = arith.divf %3, %4 : vector<4x1xf32>
    %6 = vector.broadcast %5 : vector<4x1xf32> to vector<4x256xf32>
    %7 = arith.subf %1, %6 : vector<4x256xf32>
    %8 = arith.mulf %7, %7 : vector<4x256xf32>
    %cst_3 = arith.constant dense<0.000000e+00> : vector<4xf32>
    %9 = vector.multi_reduction <add>, %8, %cst_3 [1] : vector<4x256xf32> to vector<4xf32>
    %10 = vector.shape_cast %9 : vector<4xf32> to vector<4x1xf32>
    %cst_4 = arith.constant 2.560000e+02 : f32
    %11 = vector.broadcast %cst_4 : f32 to vector<4x1xf32>
    %12 = arith.divf %10, %11 : vector<4x1xf32>
    %cst_5 = arith.constant 9.99999974E-6 : f32
    %13 = vector.broadcast %cst_5 : f32 to vector<4x1xf32>
    %14 = arith.addf %12, %13 : vector<4x1xf32>
    %15 = math.rsqrt %14 : vector<4x1xf32>
    %16 = vector.broadcast %15 : vector<4x1xf32> to vector<4x256xf32>
    %17 = arith.mulf %7, %16 : vector<4x256xf32>
    %cst_6 = arith.constant 0.000000e+00 : f32
    %18 = vector.broadcast %cst_6 : f32 to vector<4x256xf32>
    %19 = arith.maximumf %17, %18 : vector<4x256xf32>
    %c0_7 = arith.constant 0 : index
    %c0_8 = arith.constant 0 : index
    %20 = vector.load %arg3[%c0_7, %c0_8] : memref<256x64xbf16, #tpu.memory_space<vmem>>, vector<256x64xbf16>
    %21 = arith.extf %20 : vector<256x64xbf16> to vector<256x64xf32>
    %cst_9 = arith.constant dense<0.000000e+00> : vector<4x64xf32>
    %22 = tpu.matmul %19, %21, %cst_9 {dimension_numbers = #tpu.dot_dimension_numbers<[1], [0], [0], [1], [0, 0, 1, 1], [], []>} : vector<4x256xf32>, vector<256x64xf32>, vector<4x64xf32> -> vector<4x64xf32>
    %c0_10 = arith.constant 0 : index
    %c0_11 = arith.constant 0 : index
    %23 = vector.load %arg2[%c0_10, %c0_11] : memref<8x4xf32, #tpu.memory_space<vmem>>, vector<8x4xf32>
    %cst_12 = arith.constant dense<0.000000e+00> : vector<8x64xf32>
    %24 = tpu.matmul %23, %22, %cst_12 {dimension_numbers = #tpu.dot_dimension_numbers<[1], [0], [0], [1], [0, 0, 1, 1], [], []>} : vector<8x4xf32>, vector<4x64xf32>, vector<8x64xf32> -> vector<8x64xf32>
    %c0_13 = arith.constant 0 : index
    %c0_14 = arith.constant 0 : index
    %c0_15 = arith.constant 0 : index
    %25 = vector.load %arg4[%c0_13, %c0_14, %c0_15] : memref<1x8x64xf32, #tpu.memory_space<vmem>>, vector<1x8x64xf32>
    %26 = vector.shape_cast %25 : vector<1x8x64xf32> to vector<8x64xf32>
    %27 = vector.shape_cast %24 : vector<8x64xf32> to vector<1x8x64xf32>
    tpu.vector_store %arg4[%c0_13, %c0_14, %c0_15], %27 {strides = array<i32>} : memref<1x8x64xf32, #tpu.memory_space<vmem>>, vector<1x8x64xf32>,
    return
  }
  func.func @transform_0(%arg0: i32) -> (i32, i32, i32) {
    %c0_i32 = arith.constant 0 : i32
    %c0_i32_0 = arith.constant 0 : i32
    %c0_i32_1 = arith.constant 0 : i32
    return %arg0, %c0_i32, %c0_i32_0 : i32, i32, i32
  }
  func.func @transform_1(%arg0: i32) -> (i32, i32) {
    %c0_i32 = arith.constant 0 : i32
    %c0_i32_0 = arith.constant 0 : i32
    %c0_i32_1 = arith.constant 0 : i32
    return %c0_i32, %c0_i32_0 : i32, i32
  }
  func.func @transform_2(%arg0: i32) -> (i32, i32) {
    %c0_i32 = arith.constant 0 : i32
    %c0_i32_0 = arith.constant 0 : i32
    %c0_i32_1 = arith.constant 0 : i32
    return %c0_i32, %c0_i32_0 : i32, i32
  }
  func.func @transform_3(%arg0: i32) -> (i32, i32, i32) {
    %c0_i32 = arith.constant 0 : i32
    %c0_i32_0 = arith.constant 0 : i32
    %c0_i32_1 = arith.constant 0 : i32
    return %arg0, %c0_i32, %c0_i32_0 : i32, i32, i32
  }
}

</mosaic_0001>

<bundles_post_ra>
// kernel: tpu_custom_call.1
= control target key start
LH: loop header
LB: loop body
LE: loop exit
PB: predicated region body
PF: predicated region fallthrough
CT: control target
= control target key end

     0   :  { %8 = vsyncpa [#allocation3], 0  ;;  %s934_s0 = inlined_call_operand.vmem [shape: f32[2,4,256], index: 0, kind: input, shape index: {}]   ;;  %s935_s1 = inlined_call_operand.vmem [shape: f32[8,4], index: 1, kind: input, shape index: {}]   ;;  %s936_s2 = inlined_call_operand.vmem [shape: bf16[256,64], index: 2, kind: input, shape index: {}]   ;;  %s937_s3 = inlined_call_operand.hbm [shape: f32[2,8,64], index: 3, kind: output, shape index: {}]  }
   0x1   :  { %10 = vsyncpa [#allocation3 + $0x1], 0  ;;  %s770_s12 = smov 0   ;;  %s772_s13 = smov 0  }
   0x2   :  { %s774_s14 = smov 0   ;;  %s776_s15 = smov 0  }
   0x3 LB: > { %s791_s16 = sadd.s32 4294967295, %s744_s15   ;;  %s504_s17 = sadd.s32 4294967294, %s744_s15   ;;  %s744_s15 = sphi %s776_s15, %s943_s15   ;;  %s740_s14 = sphi %s774_s14, %s942_s14   ;;  %s736_s13 = sphi %s772_s13, %s941_s13   ;;  %s732_s12 = sphi %s770_s12, %s940_s12  }
   0x4   : > { %s795_s18 = sadd.s32 1, %s744_s15   ;;  %s91_s19 = sadd.s32 1, %s740_s14 }
   0x5   : > { %s88_s20 = ssub.s32 %s744_s15, %s795_s18  ;;  %p101_p0 = scmp.ne.s32.totalorder %s740_s14, %s736_s13 }
   0x6   : > { %p89_p1 = scmp.eq.s32.totalorder %s88_s20, 0  ;;  %p102_p2 = scmp.eq.s32.totalorder %s791_s16, 1 }
   0x7   : > { %p107_p3 = scmp.ne.s32.totalorder %s736_s13, %s732_s12  ;;  %p108_p4 = scmp.eq.s32.totalorder %s504_s17, 1 }
   0x8   : > { %s806_s21 = scalar_select %p89_p1, %s740_s14, %s91_s19  }
   0x9   : > { %p808_p5 = por %p102_p2, %p101_p0  ;;  %p812_p6 = por %p108_p4, %p107_p3 }
   0xa   : > { %p507_p7 = scmp.ge.s32.totalorder %s744_s15, 1  ;;  %p140_p8 = scmp.lt.s32.totalorder %s744_s15, 3 }
   0xc   : > { %p141_p9 = pnand %p507_p7, %p140_p8 }
   0xd   : > { %p164_p10 = scmp.lt.s32.totalorder (!%p141_p9), %s791_s16, 1  ;;  %s161_s27 = sand.u32 (!%p141_p9), 1, %s736_s13  }
   0xe   : > { %144 = sbr.rel (%p141_p9) target bundleno = 750 (0x2ee), region = 32  ;;  %s514_s29 = sshll.u32 (!%p141_p9), %s791_s16, 7 }
   0xf   : > { %s893_s7 = scalar_lea.hbm (!%p141_p9), %s937_s3, %s514_s29  ;;  %s432_s8 = scalar_lea.sflag (!%p141_p9), [#allocation3], %s161_s27 }
  0x13   : > { %s165_s24 = scalar_select %p164_p10, %s791_s16, 1  ;;  %vm173_vm0 = vcmask 1043456   ;;  %v596_v5 = vld [vmem:[%s936_s2 + $0x78] sm:$0xff]   ;;  %v595_v7 = vld [vmem:[%s936_s2 + $0x70] sm:$0xff]   ;;  %v746_v13 = vmov 839922192   ;;  %v185_v15 = vlaneseq }
  0x14   : > { %v588_v6 = vld [vmem:[%s936_s2 + $0x38] sm:$0xff]   ;;  %v580_v8 = vunpack.c.l.bf16 %v596_v5  ;;  %v581_v9 = vunpack.c.h.bf16 %v596_v5  ;;  %v577_v12 = vunpack.c.h.bf16 %v595_v7  ;;  %v183_v14 = vunpack.c.l.s4 %v746_v13  ;;  %v587_v28 = vld [vmem:[%s936_s2 + $0x30] sm:$0xff]   ;;  %v594_v32 = vld [vmem:[%s936_s2 + $0x68] sm:$0xff]   ;;  %s749_s16 = smov [#allocation2]  }
  0x15   : > { %s517_s25 = sshll.u32 %s165_s24, 3  ;;  %v549_v10 = vunpack.c.h.bf16 %v588_v6  ;;  %v548_v11 = vunpack.c.l.bf16 %v588_v6  ;;  %v186_v17 = vshrl.u32 %v185_v15, 7  ;;  %v545_v29 = vunpack.c.h.bf16 %v587_v28  ;;  %v586_v34 = vld [vmem:[%s936_s2 + $0x28] sm:$0xff]   ;;  %v593_v38 = vld [vmem:[%s936_s2 + $0x60] sm:$0xff]   ;;  %v592_v40 = vld [vmem:[%s936_s2 + $0x58] sm:$0xff]   ;;  %s688_s10 = sshll.u32 %s749_s16, 4  ;;  %s689_s10 = int_to_ptr.vmem [resolvable:$false] %s688_s10 }
  0x16   : > { %s168_s28 = scalar_lea.vmem %s934_s0, %s517_s25  ;;  %597 = vmatprep.subr.mxu0 %v581_v9  ;;  %v184_v16 = vunpack.c.0.s8 %v183_v14  ;;  %v576_v30 = vunpack.c.l.bf16 %v595_v7  ;;  %v544_v31 = vunpack.c.l.bf16 %v587_v28  ;;  %v573_v33 = vunpack.c.h.bf16 %v594_v32  ;;  %v585_v39 = vld [vmem:[%s936_s2 + $0x20] sm:$0xff]   ;;  %v584_v44 = vld [vmem:[%s936_s2 + $0x18] sm:$0xff]   ;;  %v591_v48 = vld [vmem:[%s936_s2 + $0x50] sm:$0xff]   ;;  %s690_s11 = scalar_lea.vmem %s689_s10, 256 }
  0x17   : > { %v169_v0 = vld [vmem:[%s168_s28] sm:$0xff]  ;;  %598 = vmatpush3.msra.mxu0 %v549_v10  ;;  %v541_v35 = vunpack.c.h.bf16 %v586_v34  ;;  %v572_v36 = vunpack.c.l.bf16 %v594_v32  ;;  %v540_v37 = vunpack.c.l.bf16 %v586_v34  ;;  %v569_v41 = vunpack.c.h.bf16 %v593_v38  ;;  %v583_v50 = vld [vmem:[%s936_s2 + $0x10] sm:$0xff]   ;;  %v590_v54 = vld [vmem:[%s936_s2 + $0x48] sm:$0xff]   ;;  %s508_s28 = sshll.u32 %s161_s27, 3 }
  0x18   : > { %v171_v1 = vcombine.high %v169_v0, %v169_v0  ;;  %v174_v2 = vsel %vm173_vm0, %v169_v0, 0.0  ;;  %599 = vmatprep.subr.mxu0 %v580_v8  ;;  %v834_v18 = vsub.s32 %v184_v16, %v186_v17  ;;  %v537_v42 = vunpack.c.h.bf16 %v585_v39  ;;  %v582_v56 = vld [vmem:[%s936_s2 + $0x8] sm:$0xff]   ;;  %v589_v60 = vld [vmem:[%s936_s2 + $0x40] sm:$0xff]   ;;  %s163_s30 = scalar_lea.vmem [#allocation2], %s508_s28 }
  0x19   : > { %600 = vmatpush3.msra.mxu0 %v548_v11  ;;  %v568_v43 = vunpack.c.l.bf16 %v593_v38  ;;  %v536_v45 = vunpack.c.l.bf16 %v585_v39  ;;  %v565_v46 = vunpack.c.h.bf16 %v592_v40  ;;  %v533_v47 = vunpack.c.h.bf16 %v584_v44  ;;  %v519_v62 = vld [vmem:[%s936_s2] sm:$0xff]   ;;  %s445_s4 = sshll.u32 %s163_s30, 4  ;;  %s895_s4 = int_to_ptr.vmem [resolvable:$true] %s445_s4 }
  0x1a   : > { %v175_v3 = vsel %vm173_vm0, %v171_v1, 0.0  ;;  %601 = vmatprep.subr.mxu0 %v577_v12  ;;  %v564_v49 = vunpack.c.l.bf16 %v592_v40  ;;  %v532_v51 = vunpack.c.l.bf16 %v584_v44  ;;  %v561_v52 = vunpack.c.h.bf16 %v591_v48  ;;  %v351_v16 = vld [vmem:[%s935_s1] sm:$0xff]  ;;  %s684_s9 = scalar_lea.vmem %s895_s4, 128  ;;  %p691_p0 = scmp.lt.s32.totalorder %s895_s4, %s689_s10 }
  0x1b   : > { %v176_v4 = vadd.f32 %v175_v3, %v174_v2  ;;  %602 = vmatpush3.msra.mxu0 %v545_v29  ;;  %v529_v53 = vunpack.c.h.bf16 %v583_v50  ;;  %v560_v55 = vunpack.c.l.bf16 %v591_v48  ;;  %v528_v57 = vunpack.c.l.bf16 %v583_v50  ;;  %p685_p11 = scmp.ne.s32.totalorder %s895_s4, %s684_s9  ;;  %p692_p1 = scmp.lt.s32.totalorder %s690_s11, %s684_s9 }
  0x1c   : > { %603 = vmatprep.subr.mxu0 %v576_v30  ;;  %v557_v58 = vunpack.c.h.bf16 %v590_v54  ;;  %v525_v59 = vunpack.c.h.bf16 %v582_v56  ;;  %v556_v61 = vunpack.c.l.bf16 %v590_v54  ;;  %v524_v63 = vunpack.c.l.bf16 %v582_v56 }
  0x1d   : > { %177 = vadd.xlane.f32.xlu0 %v176_v4  ;;  %604 = vmatpush3.msra.mxu0 %v544_v31  ;;  %v521_v1 = vunpack.c.h.bf16 %v519_v62  ;;  %v552_v2 = vunpack.c.l.bf16 %v589_v60  ;;  %v520_v3 = vunpack.c.l.bf16 %v519_v62  ;;  %v747_v12 = vmov 0.0   ;;  %p686_p12 = pnand %p685_p11, %p808_p5  ;;  %p693_p2 = por %p692_p1, %p691_p0 }
  0x1e   : > { %605 = vmatprep.subr.mxu0 %v573_v33  ;;  %634 = vmatprep.subr.mxu1 %v747_v12  ;;  %vm748_vm1 = vmmov 0   ;;  %vm352_vm2 = vcmask 31744   ;;  %vm429_vm3 = vcmask 523264  }
  0x1f   : > { %606 = vmatpush3.msra.mxu0 %v541_v35  ;;  %636 = vmatprep.mubr.msk.f32.mxu1 %vm748_vm1, %v747_v12  ;;  %p687_p13 = pneg %p686_p12 }
  0x20   : > { %607 = vmatprep.subr.mxu0 %v572_v36 }
  0x21   : > { %608 = vmatpush3.msra.mxu0 %v540_v37  ;;  %p694_p3 = pnand %p693_p2, %p687_p13 }
  0x22   : > { %609 = vmatprep.subr.mxu0 %v569_v41 }
  0x23   : > { %610 = vmatpush3.msra.mxu0 %v537_v42 }
  0x24   : > { %611 = vmatprep.subr.mxu0 %v568_v43 }
  0x25   : > { %612 = vmatpush3.msra.mxu0 %v536_v45 }
  0x26   : > { %613 = vmatprep.subr.mxu0 %v565_v46 }
  0x27   : > { %614 = vmatpush3.msra.mxu0 %v533_v47 }
  0x28   : > { %615 = vmatprep.subr.mxu0 %v564_v49 }
  0x29   : > { %616 = vmatpush3.msra.mxu0 %v532_v51 }
  0x2a   : > { %617 = vmatprep.subr.mxu0 %v561_v52 }
  0x2b   : > { %618 = vmatpush3.msra.mxu0 %v529_v53 }
  0x2c   : > { %619 = vmatprep.subr.mxu0 %v560_v55 }
  0x2d   : > { %620 = vmatpush3.msra.mxu0 %v528_v57 }
  0x2e   : > { %621 = vmatprep.subr.mxu0 %v557_v58 }
  0x2f   : > { %622 = vmatpush3.msra.mxu0 %v525_v59 }
  0x30   : > { %623 = vmatprep.subr.mxu0 %v556_v61 }
  0x31   : > { %624 = vmatpush3.msra.mxu0 %v524_v63 }
  0xa6   : > { %v178_v19 = vpop.xlane.xlu0 %177 }
  0xa7   : > { %v180_v20 = vmul.f32 0.00390625, %v178_v19 }
  0xa9   : > { %v188_v21 = vrot.slane %v180_v20, %v834_v18 }
  0xab   : > { %v837_v22 = vsub.f32 %v169_v0, %v188_v21  ;;  %v553_v0 = vunpack.c.h.bf16 %v589_v60 }
  0xad   : > { %v191_v23 = vmul.f32 %v837_v22, %v837_v22  ;;  %625 = vmatprep.subr.mxu0 %v553_v0 }
  0xae   : > { %626 = vmatpush3.msra.mxu0 %v521_v1 }
  0xaf   : > { %v193_v24 = vcombine.high %v191_v23, %v191_v23  ;;  %v195_v25 = vsel %vm173_vm0, %v191_v23, 0.0  ;;  %627 = vmatprep.subr.mxu0 %v552_v2 }
  0xb0   : > { %628 = vmatpush3.msra.mxu0 %v520_v3 }
  0xb1   : > { %v196_v26 = vsel %vm173_vm0, %v193_v24, 0.0 }
  0xb2   : > { %v197_v27 = vadd.f32 %v196_v26, %v195_v25 }
  0xb4   : > { %198 = vadd.xlane.f32.xlu0 %v197_v27 }
 0x13d   : > { %v199_v4 = vpop.xlane.xlu0 %198 }
 0x13e   : > { %v200_v5 = vmul.f32 0.00390625, %v199_v4 }
 0x140   : > { %v201_v6 = vadd.f32 1e-05, %v200_v5 }
 0x142   : > { %682 = vrsqrt.f32 %v201_v6 }
 0x14f   : > { %v683_v7 = vpop.eup %682 }
 0x150   : > { %v210_v8 = vrot.slane %v683_v7, %v834_v18 }
 0x152   : > { %v212_v9 = vmul.f32 %v210_v8, %v837_v22 }
 0x154   : > { %v213_v10 = vmax.f32 %v212_v9, 0.0 }
 0x156   : > { %v279_v11 = vcombine.high %v213_v10, %v213_v10 }
 0x158   : > { %345 = vmatprep.mubr.f32.mxu0 %v279_v11 }
 0x159   : > { %346 = vmatmul.mubr.f32.vlgmr.msra.gmra.mxu0 %v213_v10 }
 0x219   : > { %v629_v13 = vpop.f32.mrf.mxu0 }
 0x21b   : > { %v630_v14 = vpop.f32.mrf.mxu0 }
 0x21c   : > { %v631_v15 = vadd.f32 %v630_v14, %v629_v13 }
 0x21e   : > { %635 = vmatpush3.msk.msra.mxu1 %vm173_vm0, %v631_v15 }
 0x21f   : > { %637 = vmatmul.mubr.msk.f32.vlgmr.msra.gmra.mxu1 %vm352_vm2, %v351_v16 }
 0x2df   : > { %v425_v17 = vpop.f32.mrf.mxu1 }
 0x2e0   : > { %430 = vst.msk [vmem:[%s163_s30] sm:$0xff] %vm429_vm3, %v425_v17 }
 0x2e1   : > { %v638_v18 = vpop.f32.mrf.mxu1 }
 0x2e2   : > { %697 = shalt.err (!%p694_p3)
}
 0x2e3   : > { %s698_s17 = scalar_lea.hbm %s893_s7, 128  ;;  %s702_s24 = scalar_lea.hbm %s937_s3, 256 }
 0x2e4   : > { %p699_p4 = scmp.ne.s32.totalorder %s893_s7, %s698_s17  ;;  %p703_p9 = scmp.lt.s32.totalorder %s893_s7, %s937_s3 }
 0x2e5   : > { %p704_p10 = scmp.lt.s32.totalorder %s702_s24, %s698_s17 }
 0x2e6   : > { %p700_p7 = pnand %p699_p4, %p808_p5 }
 0x2e7   : > { %p705_p11 = por %p704_p10, %p703_p9 }
 0x2e8   : > { %p701_p8 = pneg %p700_p7 }
 0x2ea   : > { %p706_p12 = pnand %p705_p11, %p701_p8 }
 0x2ec   : > { %709 = shalt.err (!%p706_p12)
}
 0x2ed   : > { %639 = dma.vmem_to_hbm [thread:$0]  (%p808_p5), %s895_s4, 128, %s893_s7, %s432_s8  }
 0x2ee PF: > { %p645_p13 = scmp.ge.s32.totalorder %s744_s15, 2  ;;  %s457_s27 = sand.u32 1, %s732_s12  }
 0x2ef   : > { %s458_s28 = scalar_lea.sflag [#allocation3], %s457_s27 }
 0x2f0   : > { %p642_p0 = pnand %p645_p13, %p812_p6 }
 0x2f2   : > { %p643_p1 = pneg %p642_p0 }
 0x2f4   : > { %727 = dma.done.wait (%p643_p1), %s458_s28, 128  }
 0x2f5   : > { %729 = vsyncadd (%p643_p1), %s458_s28, 4294967168  ;;  %p13_p2 = scmp.ge.s32.totalorder %s795_s18, 4   ;;  %s940_s12 = smov %s736_s13 }
 0x2f6   : > { %s941_s13 = smov %s740_s14  ;;  %s942_s14 = smov %s806_s21 }
 0x2f7   : > { %s943_s15 = smov %s795_s18  ;;  %15 = sbr.rel (!%p13_p2) target bundleno = 3 (0x3), region = 67 }
 0x2fc   :  { %463 = vsyncpa [#allocation3], 1 }
 0x2fd   :  { %465 = vsyncpa [#allocation3 + $0x1], 1 }

</bundles_post_ra>
